<compile_context>
chip_gen: v7x
topology: tpu7x:2x2x1
jax: 0.10.0
libtpu: 0.0.40
codegen_flags: <defaults>
</compile_context>

<pallas_src>
import functools

import jax
import jax.numpy as jnp
import numpy as np
from jax.experimental import pallas as pl
from jax.experimental.pallas import tpu as pltpu

THRESHOLD = 0.3


def _detector_kernel(x_ref, w1t_ref, b1_ref, wht_ref, bh_ref, pre_ref, mul_ref,
                     anc_ref, out_ref):
    # Backbone 1x1 conv over P spatial positions: (F, C) @ (C, P), f32 in /
    # f32 accumulation (tiny K, but keeps the dot->relu->dot chain tight).
    feat = jnp.dot(w1t_ref[...], x_ref[...], preferred_element_type=jnp.float32)
    feat = jnp.maximum(feat + b1_ref[...], 0.0)                        # (F, P)

    # Detection head padded to a full 8-sublane block:
    #   row 0: score logit, rows 3-6: box-delta logits (l, t, r, b), rows 1,2,7: 0
    head = jnp.dot(wht_ref[...], feat,
                   preferred_element_type=jnp.float32) + bh_ref[...]   # (8, P)

    # One dense EUP pass over the whole block:
    #   sigmoid(x) = 0.5 * tanh(0.5 x) + 0.5, so row 0 is pre-scaled by 0.5
    #   (pre_ref) and fixed up by the per-row affine below.
    t = jnp.tanh(head * pre_ref[...])                                   # (8, P)

    # Full-height decode in one clip pass (per-row affine precomputed host-side):
    #   row 0:   0.5*t + 0.5                        -> sigmoid score (clip no-op)
    #   rows 3-6: ((anchor -/+ 2) + 2*t) / (W or H) -> clipped, normalized box
    #   rows 1,2,7: 0
    full = jnp.clip(t * mul_ref[...] + anc_ref[...], 0.0, 1.0)          # (8, P)

    # Single full-width (8, P) store, then a 2-row fix-up with the normalized
    # centers: rows 1,2 <- [(l+r)/(2W), (t+b)/(2H)].
    out_ref[...] = full
    out_ref[1:3, :] = (full[3:5, :] + full[5:7, :]) * 0.5


def detector_pallas(x, w1t, b1c, wht8, bh8, pre_col, mul_col, anc):
    """x: (bs, C, P) f32.  Returns the fused (bs, 8, P) f32 output slab."""
    bs, C, P = x.shape
    F = w1t.shape[0]
    return pl.pallas_call(
        _detector_kernel,
        out_shape=jax.ShapeDtypeStruct((bs, 8, P), jnp.float32),
        grid=(bs,),
        in_specs=[
            pl.BlockSpec((None, C, P), lambda b: (b, 0, 0)),   # per-image block
            pl.BlockSpec((F, C), lambda b: (0, 0)),            # weights stay resident
            pl.BlockSpec((F, 1), lambda b: (0, 0)),
            pl.BlockSpec((8, F), lambda b: (0, 0)),
            pl.BlockSpec((8, 1), lambda b: (0, 0)),
            pl.BlockSpec((8, 1), lambda b: (0, 0)),
            pl.BlockSpec((8, 1), lambda b: (0, 0)),
            pl.BlockSpec((8, P), lambda b: (0, 0)),
        ],
        out_specs=pl.BlockSpec((None, 8, P), lambda b: (b, 0, 0)),
        compiler_params=pltpu.CompilerParams(
            dimension_semantics=("parallel",),          # shard batch across v7x TCs
            vmem_limit_bytes=32 * 1024 * 1024),          # explicit v5e headroom
    )(x, w1t, b1c, wht8, bh8, pre_col, mul_col, anc)


@functools.partial(jax.jit, static_argnames=("threshold",))
def _device_forward(observations, w1, b1, wh, bh, *, threshold):
    """Everything up to the ragged list assembly runs on device in one jit."""
    bs, C, H, W = observations.shape
    P = H * W

    # (bs, C, H, W) -> (bs, C, P): free reshape, no transpose / extra HBM pass.
    x = observations.reshape(bs, C, P).astype(jnp.float32)

    F = w1.shape[1]
    w1t = w1.T.astype(jnp.float32)                     # (F, C)
    b1c = b1.reshape(F, 1).astype(jnp.float32)         # (F, 1)

    # Head weights padded to 8 rows: row 0 = score, rows 3-6 = (l,t,r,b) deltas.
    whT = wh.T.astype(jnp.float32)                     # (5, F)
    bhv = bh.reshape(-1).astype(jnp.float32)           # (5,)
    wht8 = jnp.zeros((8, F), jnp.float32)
    wht8 = wht8.at[0, :].set(whT[0]).at[3:7, :].set(whT[1:5])
    bh8 = jnp.zeros((8, 1), jnp.float32)
    bh8 = bh8.at[0, 0].set(bhv[0]).at[3:7, 0].set(bhv[1:5])

    half = 2.0
    # Per-row columns: tanh pre-scale and post-multiply (box half-size and
    # 1/W,1/H normalization folded together; clip bounds fold to [0, 1]).
    pre_col = jnp.array([[0.5], [0.], [0.], [1.], [1.], [1.], [1.], [0.]],
                        jnp.float32)
    mul_col = jnp.array([[0.5], [0.], [0.],
                         [half / W], [half / H], [half / W], [half / H], [0.]],
                        jnp.float32)

    # Lane-dense per-position anchor slab (8, P), normalization folded in:
    #   row 0: +0.5 sigmoid offset; rows 3-6: (cx-2)/W, (cy-2)/H, (cx+2)/W, (cy+2)/H
    p = jnp.arange(P, dtype=jnp.int32)
    cx = (p % W).astype(jnp.float32) + 0.5
    cy = (p // W).astype(jnp.float32) + 0.5
    anc = jnp.zeros((8, P), jnp.float32)
    anc = anc.at[0, :].set(0.5)
    anc = anc.at[3, :].set((cx - half) / W)
    anc = anc.at[4, :].set((cy - half) / H)
    anc = anc.at[5, :].set((cx + half) / W)
    anc = anc.at[6, :].set((cy + half) / H)

    out = detector_pallas(x, w1t, b1c, wht8, bh8, pre_col, mul_col, anc)  # (bs,8,P)

    scores = out[:, 0, :]                                                 # (bs, P)
    # Slab rows: 1 = normalized col center, 2 = normalized row center;
    # compute_normalized_center returns (row, col).
    centers = jnp.stack([out[:, 2, :], out[:, 1, :]], axis=-1)            # (bs,P,2)
    boxes = jnp.moveaxis(out[:, 3:7, :], 1, 2)                            # (bs,P,4)

    # torchvision returns detections sorted by descending score; reproduce that
    # ordering plus the threshold-prefix length on device.
    order = jnp.argsort(-scores, axis=-1)
    scores_sorted = jnp.take_along_axis(scores, order, axis=-1)
    centers_sorted = jnp.take_along_axis(
        centers, jnp.broadcast_to(order[:, :, None], centers.shape), axis=1)
    boxes_sorted = jnp.take_along_axis(
        boxes, jnp.broadcast_to(order[:, :, None], boxes.shape), axis=1)
    counts = jnp.sum(scores_sorted > threshold, axis=-1).astype(jnp.int32)
    return counts, centers_sorted, boxes_sorted


def minecraft_player_detector_forward(observations, params, threshold=THRESHOLD):
    """observations: (bs, C, H, W) float32 (NCHW, matching the PyTorch module).

    Returns (all_predicted_centers, all_predicted_boxes): per-image lists of
    (2,) normalized centers and (4,) normalized boxes, as in the PyTorch forward.
    """
    bs = observations.shape[0]
    outs = _device_forward(observations, params["w1"], params["b1"],
                           params["wh"], params["bh"], threshold=threshold)
    outs = jax.block_until_ready(outs)
    counts_np, centers_np, boxes_np = jax.device_get(outs)   # one bulk transfer

    all_predicted_centers, all_predicted_boxes = [], []
    for b in range(bs):
        # Detections are score-sorted, so the original prefix-up-to-the-last
        # score-above-threshold rule == keep the first counts[b] entries.
        # check_box_dimensions always returns 1; every detection is 'person'.
        k = int(counts_np[b])
        all_predicted_centers.append(list(centers_np[b, :k]))
        all_predicted_boxes.append(list(boxes_np[b, :k]))
    return all_predicted_centers, all_predicted_boxes


def init_params(key, C=4, F=32):
    k1, k2, k3, k4 = jax.random.split(key, 4)
    return {
        "w1": jax.random.normal(k1, (C, F), jnp.float32) * 0.5,
        "b1": jax.random.normal(k2, (1, F), jnp.float32) * 0.1,
        "wh": jax.random.normal(k3, (F, 5), jnp.float32) * 0.5,
        "bh": jax.random.normal(k4, (1, 5), jnp.float32) * 0.1,
    }


if __name__ == "__main__":
    # TODO(synk): the pretrained Faster R-CNN checkpoint load / RPN / NMS of
    # the original module has no in-script Pallas equivalent; a deterministic
    # synthetic single-stage detector head is used instead.
    key = jax.random.PRNGKey(0)
    k_obs, k_par = jax.random.split(key)
    bs, C, H, W = 2, 4, 16, 16
    observations = jax.random.uniform(k_obs, (bs, C, H, W), jnp.float32)
    params = init_params(k_par, C=C, F=32)

    centers_lists, boxes_lists = minecraft_player_detector_forward(
        observations, params)

    # sanity: structural checks on the outputs
    assert len(centers_lists) == bs and len(boxes_lists) == bs
    for cl, bl in zip(centers_lists, boxes_lists):
        assert len(cl) == len(bl)
        for c, bx in zip(cl, bl):
            assert c.shape == (2,) and bx.shape == (4,)
            assert float(np.min(c)) >= 0.0 and float(np.max(c)) <= 1.0
            assert float(np.min(bx)) >= 0.0 and float(np.max(bx)) <= 1.0
    print("KERNEL_OK")
</pallas_src>

<mosaic_0001>
module attributes {stable_mosaic.version = 11 : i64} {
  func.func private @main(%arg0: i32) attributes {dimension_semantics = [#tpu.dimension_semantics<core_parallel>], iteration_bounds = array<i64: 2>, tpu.core_type = #tpu.core_type<sc_scalar_subcore>, window_params = []} {
    return
  }
}

module attributes {stable_mosaic.version = 11 : i64} {
  func.func private @main(%arg0: i32) attributes {dimension_semantics = [#tpu.dimension_semantics<core_parallel>], iteration_bounds = array<i64: 2>, tpu.core_type = #tpu.core_type<sc_scalar_subcore>, window_params = []} {
    return
  }
}

module attributes {stable_mosaic.version = 11 : i64} {
  func.func @_detector_kernel(%arg0: i32, %arg1: memref<1x4x256xf32, #tpu.memory_space<vmem>>, %arg2: memref<32x4xf32, #tpu.memory_space<vmem>>, %arg3: memref<32x1xf32, #tpu.memory_space<vmem>>, %arg4: memref<8x32xf32, #tpu.memory_space<vmem>>, %arg5: memref<8x1xf32, #tpu.memory_space<vmem>>, %arg6: memref<8x1xf32, #tpu.memory_space<vmem>>, %arg7: memref<8x1xf32, #tpu.memory_space<vmem>>, %arg8: memref<8x256xf32, #tpu.memory_space<vmem>>, %arg9: memref<1x8x256xf32, #tpu.memory_space<vmem>>) attributes {dimension_semantics = [#tpu.dimension_semantics<parallel>], iteration_bounds = array<i64: 2>, scalar_prefetch = 0 : i64, scratch_operands = 0 : i64, tpu.core_type = #tpu.core_type<tc>, window_params = [{transform_indices = @transform_0, window_bounds = array<i64: 1, 4, 256>}, {pipeline_mode = #tpu.pipeline_mode<synchronous>, transform_indices = @transform_1, window_bounds = array<i64: 32, 4>}, {pipeline_mode = #tpu.pipeline_mode<synchronous>, transform_indices = @transform_2, window_bounds = array<i64: 32, 1>}, {pipeline_mode = #tpu.pipeline_mode<synchronous>, transform_indices = @transform_3, window_bounds = array<i64: 8, 32>}, {pipeline_mode = #tpu.pipeline_mode<synchronous>, transform_indices = @transform_4, window_bounds = array<i64: 8, 1>}, {pipeline_mode = #tpu.pipeline_mode<synchronous>, transform_indices = @transform_5, window_bounds = array<i64: 8, 1>}, {pipeline_mode = #tpu.pipeline_mode<synchronous>, transform_indices = @transform_6, window_bounds = array<i64: 8, 1>}, {pipeline_mode = #tpu.pipeline_mode<synchronous>, transform_indices = @transform_7, window_bounds = array<i64: 8, 256>}, {transform_indices = @transform_8, window_bounds = array<i64: 1, 8, 256>}]} {
    %c0 = arith.constant 0 : index
    %c0_0 = arith.constant 0 : index
    %0 = vector.load %arg2[%c0, %c0_0] : memref<32x4xf32, #tpu.memory_space<vmem>>, vector<32x4xf32>
    %c0_1 = arith.constant 0 : index
    %c0_2 = arith.constant 0 : index
    %c0_3 = arith.constant 0 : index
    %1 = vector.load %arg1[%c0_1, %c0_2, %c0_3] : memref<1x4x256xf32, #tpu.memory_space<vmem>>, vector<1x4x256xf32>
    %2 = vector.shape_cast %1 : vector<1x4x256xf32> to vector<4x256xf32>
    %cst = arith.constant dense<0.000000e+00> : vector<32x256xf32>
    %3 = tpu.matmul %0, %2, %cst {dimension_numbers = #tpu.dot_dimension_numbers<[1], [0], [0], [1], [0, 0, 1, 1], [], []>} : vector<32x4xf32>, vector<4x256xf32>, vector<32x256xf32> -> vector<32x256xf32>
    %c0_4 = arith.constant 0 : index
    %c0_5 = arith.constant 0 : index
    %4 = vector.load %arg3[%c0_4, %c0_5] : memref<32x1xf32, #tpu.memory_space<vmem>>, vector<32x1xf32>
    %5 = vector.broadcast %4 : vector<32x1xf32> to vector<32x256xf32>
    %6 = arith.addf %3, %5 : vector<32x256xf32>
    %cst_6 = arith.constant 0.000000e+00 : f32
    %7 = vector.broadcast %cst_6 : f32 to vector<32x256xf32>
    %8 = arith.maximumf %6, %7 : vector<32x256xf32>
    %c0_7 = arith.constant 0 : index
    %c0_8 = arith.constant 0 : index
    %9 = vector.load %arg4[%c0_7, %c0_8] : memref<8x32xf32, #tpu.memory_space<vmem>>, vector<8x32xf32>
    %cst_9 = arith.constant dense<0.000000e+00> : vector<8x256xf32>
    %10 = tpu.matmul %9, %8, %cst_9 {dimension_numbers = #tpu.dot_dimension_numbers<[1], [0], [0], [1], [0, 0, 1, 1], [], []>} : vector<8x32xf32>, vector<32x256xf32>, vector<8x256xf32> -> vector<8x256xf32>
    %c0_10 = arith.constant 0 : index
    %c0_11 = arith.constant 0 : index
    %11 = vector.load %arg5[%c0_10, %c0_11] : memref<8x1xf32, #tpu.memory_space<vmem>>, vector<8x1xf32>
    %12 = vector.broadcast %11 : vector<8x1xf32> to vector<8x256xf32>
    %13 = arith.addf %10, %12 : vector<8x256xf32>
    %c0_12 = arith.constant 0 : index
    %c0_13 = arith.constant 0 : index
    %14 = vector.load %arg6[%c0_12, %c0_13] : memref<8x1xf32, #tpu.memory_space<vmem>>, vector<8x1xf32>
    %15 = vector.broadcast %14 : vector<8x1xf32> to vector<8x256xf32>
    %16 = arith.mulf %13, %15 : vector<8x256xf32>
    %17 = math.tanh %16 : vector<8x256xf32>
    %c0_14 = arith.constant 0 : index
    %c0_15 = arith.constant 0 : index
    %18 = vector.load %arg7[%c0_14, %c0_15] : memref<8x1xf32, #tpu.memory_space<vmem>>, vector<8x1xf32>
    %19 = vector.broadcast %18 : vector<8x1xf32> to vector<8x256xf32>
    %20 = arith.mulf %17, %19 : vector<8x256xf32>
    %c0_16 = arith.constant 0 : index
    %c0_17 = arith.constant 0 : index
    %21 = vector.load %arg8[%c0_16, %c0_17] : memref<8x256xf32, #tpu.memory_space<vmem>>, vector<8x256xf32>
    %22 = arith.addf %20, %21 : vector<8x256xf32>
    %cst_18 = arith.constant 0.000000e+00 : f32
    %cst_19 = arith.constant 1.000000e+00 : f32
    %23 = vector.broadcast %cst_18 : f32 to vector<8x256xf32>
    %24 = arith.maximumf %23, %22 : vector<8x256xf32>
    %25 = vector.broadcast %cst_19 : f32 to vector<8x256xf32>
    %26 = arith.minimumf %25, %24 : vector<8x256xf32>
    %c0_20 = arith.constant 0 : index
    %c0_21 = arith.constant 0 : index
    %c0_22 = arith.constant 0 : index
    %27 = vector.load %arg9[%c0_20, %c0_21, %c0_22] : memref<1x8x256xf32, #tpu.memory_space<vmem>>, vector<1x8x256xf32>
    %28 = vector.shape_cast %27 : vector<1x8x256xf32> to vector<8x256xf32>
    %29 = vector.shape_cast %26 : vector<8x256xf32> to vector<1x8x256xf32>
    tpu.vector_store %arg9[%c0_20, %c0_21, %c0_22], %29 {strides = array<i32>} : memref<1x8x256xf32, #tpu.memory_space<vmem>>, vector<1x8x256xf32>,
    %30 = vector.extract_strided_slice %26 {offsets = [3, 0], sizes = [2, 256], strides = [1, 1]} : vector<8x256xf32> to vector<2x256xf32>
    %31 = vector.extract_strided_slice %26 {offsets = [5, 0], sizes = [2, 256], strides = [1, 1]} : vector<8x256xf32> to vector<2x256xf32>
    %32 = arith.addf %30, %31 : vector<2x256xf32>
    %cst_23 = arith.constant 5.000000e-01 : f32
    %33 = vector.broadcast %cst_23 : f32 to vector<2x256xf32>
    %34 = arith.mulf %32, %33 : vector<2x256xf32>
    %c0_24 = arith.constant 0 : index
    %c1 = arith.constant 1 : index
    %c0_25 = arith.constant 0 : index
    %35 = vector.load %arg9[%c0_24, %c1, %c0_25] : memref<1x8x256xf32, #tpu.memory_space<vmem>>, vector<1x2x256xf32>
    %36 = vector.shape_cast %35 : vector<1x2x256xf32> to vector<2x256xf32>
    %37 = vector.shape_cast %34 : vector<2x256xf32> to vector<1x2x256xf32>
    tpu.vector_store %arg9[%c0_24, %c1, %c0_25], %37 {strides = array<i32>} : memref<1x8x256xf32, #tpu.memory_space<vmem>>, vector<1x2x256xf32>,
    return
  }
  func.func @transform_0(%arg0: i32) -> (i32, i32, i32) {
    %c0_i32 = arith.constant 0 : i32
    %c0_i32_0 = arith.constant 0 : i32
    %c0_i32_1 = arith.constant 0 : i32
    return %arg0, %c0_i32, %c0_i32_0 : i32, i32, i32
  }
  func.func @transform_1(%arg0: i32) -> (i32, i32) {
    %c0_i32 = arith.constant 0 : i32
    %c0_i32_0 = arith.constant 0 : i32
    %c0_i32_1 = arith.constant 0 : i32
    return %c0_i32, %c0_i32_0 : i32, i32
  }
  func.func @transform_2(%arg0: i32) -> (i32, i32) {
    %c0_i32 = arith.constant 0 : i32
    %c0_i32_0 = arith.constant 0 : i32
    %c0_i32_1 = arith.constant 0 : i32
    return %c0_i32, %c0_i32_0 : i32, i32
  }
  func.func @transform_3(%arg0: i32) -> (i32, i32) {
    %c0_i32 = arith.constant 0 : i32
    %c0_i32_0 = arith.constant 0 : i32
    %c0_i32_1 = arith.constant 0 : i32
    return %c0_i32, %c0_i32_0 : i32, i32
  }
  func.func @transform_4(%arg0: i32) -> (i32, i32) {
    %c0_i32 = arith.constant 0 : i32
    %c0_i32_0 = arith.constant 0 : i32
    %c0_i32_1 = arith.constant 0 : i32
    return %c0_i32, %c0_i32_0 : i32, i32
  }
  func.func @transform_5(%arg0: i32) -> (i32, i32) {
    %c0_i32 = arith.constant 0 : i32
    %c0_i32_0 = arith.constant 0 : i32
    %c0_i32_1 = arith.constant 0 : i32
    return %c0_i32, %c0_i32_0 : i32, i32
  }
  func.func @transform_6(%arg0: i32) -> (i32, i32) {
    %c0_i32 = arith.constant 0 : i32
    %c0_i32_0 = arith.constant 0 : i32
    %c0_i32_1 = arith.constant 0 : i32
    return %c0_i32, %c0_i32_0 : i32, i32
  }
  func.func @transform_7(%arg0: i32) -> (i32, i32) {
    %c0_i32 = arith.constant 0 : i32
    %c0_i32_0 = arith.constant 0 : i32
    %c0_i32_1 = arith.constant 0 : i32
    return %c0_i32, %c0_i32_0 : i32, i32
  }
  func.func @transform_8(%arg0: i32) -> (i32, i32, i32) {
    %c0_i32 = arith.constant 0 : i32
    %c0_i32_0 = arith.constant 0 : i32
    %c0_i32_1 = arith.constant 0 : i32
    return %arg0, %c0_i32, %c0_i32_0 : i32, i32, i32
  }
}

</mosaic_0001>

<bundles_post_ra>
// kernel: _device_forward.1
= control target key start
LH: loop header
LB: loop body
LE: loop exit
PB: predicated region body
PF: predicated region fallthrough
CT: control target
= control target key end

     0   :  { %s735_s27 = smov 0   ;;  %s802_s0 = inlined_call_operand.vmem [shape: f32[2,4,256], index: 0, kind: input, shape index: {}]   ;;  %s803_s1 = inlined_call_operand.vmem [shape: f32[32,4], index: 1, kind: input, shape index: {}]   ;;  %s804_s2 = inlined_call_operand.vmem [shape: f32[32,1], index: 2, kind: input, shape index: {}]   ;;  %s805_s3 = inlined_call_operand.vmem [shape: f32[8,32], index: 3, kind: input, shape index: {}]   ;;  %s806_s4 = inlined_call_operand.vmem [shape: f32[8,1], index: 4, kind: input, shape index: {}]   ;;  %s807_s5 = inlined_call_operand.vmem [shape: f32[8,1], index: 5, kind: input, shape index: {}]   ;;  %s808_s6 = inlined_call_operand.vmem [shape: f32[8,1], index: 6, kind: input, shape index: {}]   ;;  %s809_s7 = inlined_call_operand.vmem [shape: f32[8,256], index: 7, kind: input, shape index: {}]   ;;  %s810_s8 = inlined_call_operand.vmem [shape: f32[2,8,256], index: 8, kind: output, shape index: {}]  }
   0x1 LB: > { %s635_s28 = sadd.s32 4294967295, %s686_s27   ;;  %p639_p0 = scmp.ge.s32.totalorder %s686_s27, 1  ;;  %s686_s27 = sphi %s735_s27, %s18_s27  }
   0x2   : > { %p262_p1 = scmp.lt.s32.totalorder %s686_s27, 3 }
   0x4   : > { %p263_p2 = pnand %p639_p0, %p262_p1 }
   0x5   : > { %p296_p3 = scmp.lt.s32.totalorder (!%p263_p2), %s635_s28, 1  ;;  %v688_v0 = vmov (!%p263_p2), 0.0   ;;  %v311_v1 = vld [vmem:[%s804_s2] sm:$0xff] (!%p263_p2)  ;;  %v689_v2 = vmov (!%p263_p2), 0   ;;  %v313_v3 = vld [vmem:[%s804_s2 + $0x10] sm:$0xff] (!%p263_p2)  ;;  %v312_v4 = vld [vmem:[%s804_s2 + $0x8] sm:$0xff] (!%p263_p2) }
   0x6   : > { %266 = sbr.rel (%p263_p2) target bundleno = 501 (0x1f5), region = 52  ;;  %419 = vmatprep.mubr.f32.mxu0 (!%p263_p2), %v688_v0  ;;  %527 = vmatprep.mubr.f32.mxu1 (!%p263_p2), %v688_v0  ;;  %v314_v5 = vld [vmem:[%s804_s2 + $0x18] sm:$0xff] (!%p263_p2)  ;;  %vm350_vm0 = vcmask (!%p263_p2), 1043456   ;;  %v306_v8 = vld [vmem:[%s803_s1] sm:$0xff] (!%p263_p2)  ;;  %vm337_vm1 = vcmask (!%p263_p2), 31744   ;;  %v307_v11 = vld [vmem:[%s803_s1 + $0x8] sm:$0xff] (!%p263_p2) }
   0x7   : > { %673 = vset.pattern.permute.xlu0 (!%p263_p2), %v689_v2  ;;  %674 = vset.pattern.permute.xlu1 (!%p263_p2), %v689_v2  ;;  %v453_v9 = vld [vmem:[%s806_s4] sm:$0xff] (!%p263_p2)  ;;  %v308_v13 = vld [vmem:[%s803_s1 + $0x10] sm:$0xff] (!%p263_p2)  ;;  %v309_v14 = vld [vmem:[%s803_s1 + $0x18] sm:$0xff] (!%p263_p2)  ;;  %vm459_vm2 = vcmask (!%p263_p2), 261120  }
   0x8   : > { %317 = vperm.xlu0 (!%p263_p2), %673, %v311_v1   ;;  %327 = vperm.xlu1 (!%p263_p2), %674, %v313_v3   ;;  %v534_v10 = vld [vmem:[%s807_s5] sm:$0xff] (!%p263_p2)  ;;  %v553_v61 = vld [vmem:[%s809_s7 + $0x8] sm:$0xff] (!%p263_p2) }
   0x9   : > { %v544_v12 = vld [vmem:[%s808_s6] sm:$0xff] (!%p263_p2) }
   0xa   : > { %v452_v47 = vld [vmem:[%s805_s3] sm:$0xff] (!%p263_p2) }
   0xb   : > { %v552_v58 = vld [vmem:[%s809_s7] sm:$0xff] (!%p263_p2) }
   0xc   : > { %322 = vperm.xlu0 (!%p263_p2), %673, %v312_v4   ;;  %332 = vperm.xlu1 (!%p263_p2), %674, %v314_v5  }
   0xd   : > { %s812_s28 = smov (!%p296_p3, %s635_s28), 1 }
   0xe   : > { %s653_s11 = sshll.u32 %s812_s28, 3  ;;  %s654_s19 = sshll.u32 %s812_s28, 4 }
   0xf   : > { %s300_s18 = scalar_lea.vmem %s802_s0, %s653_s11  ;;  %s305_s22 = scalar_lea.vmem %s810_s8, %s654_s19 }
  0x10   : > { %v310_v6 = vld [vmem:[%s300_s18] sm:$0xff]  ;;  %456 = vperm.xlu0 %673, %v453_v9   ;;  %537 = vperm.xlu1 %674, %v534_v10  }
  0x11   : > { %v336_v7 = vcombine.high %v310_v6, %v310_v6 }
  0x13   : > { %644 = vmatprep.subr.msk.mxu0 %vm350_vm0, %v336_v7 }
  0x14   : > { %645 = vmatpush1.msk.msra.mxu0 %vm350_vm0, %v310_v6  ;;  %547 = vperm.xlu0 %673, %v544_v12  }
  0x15   : > { %646 = vmatmul.mubr.msk.f32.vlgmr.msra.gmra.mrb[0].mxu0 %vm337_vm1, %v306_v8 }
  0x16   : > { %425 = vmatprep.mubr.f32.mxu0 %v688_v0 }
  0x19   : > { %647 = vmatmul.mubr.msk.f32.gmra.mrb[2].mxu0 %vm337_vm1, %v307_v11 }
  0x1a   : > { %431 = vmatprep.mubr.f32.mxu0 %v688_v0 }
  0x1d   : > { %648 = vmatmul.mubr.msk.f32.gmra.mrb[4].mxu0 %vm337_vm1, %v308_v13 }
  0x1e   : > { %437 = vmatprep.mubr.f32.mxu0 %v688_v0 }
  0x21   : > { %649 = vmatmul.mubr.msk.f32.gmra.mrb[6].mxu0 %vm337_vm1, %v309_v14 }
  0x87   : > { %v318_v15 = vpop.permute.xlu0 %317  ;;  %v328_v24 = vpop.permute.xlu1 %327 }
  0x8b   : > { %v323_v19 = vpop.permute.xlu0 %322  ;;  %v333_v35 = vpop.permute.xlu1 %332 }
  0x8f   : > { %v457_v48 = vpop.permute.xlu0 %456  ;;  %v538_v52 = vpop.permute.xlu1 %537 }
  0x93   : > { %v548_v57 = vpop.permute.xlu0 %547 }
  0xe8   : > { %v421_v16 = vpop.f32.mrb[0].mxu0 }
  0xe9   : > { %v423_v17 = vpop.f32.mrb[1].mxu0  ;;  %v422_v18 = vadd.f32 %v421_v16, %v318_v15 }
  0xea   : > { %v424_v20 = vadd.f32 %v423_v17, %v318_v15 }
  0xeb   : > { %v444_v26 = vmax.f32 %v422_v18, 0.0 }
  0xec   : > { %v427_v21 = vpop.f32.mrb[2].mxu0  ;;  %v445_v28 = vmax.f32 %v424_v20, 0.0 }
  0xed   : > { %v428_v22 = vadd.f32 %v427_v21, %v323_v19  ;;  %v429_v23 = vpop.f32.mrb[3].mxu0 }
  0xee   : > { %v430_v25 = vadd.f32 %v429_v23, %v323_v19 }
  0xef   : > { %v446_v27 = vmax.f32 %v428_v22, 0.0 }
  0xf0   : > { %v447_v29 = vmax.f32 %v430_v25, 0.0  ;;  %v433_v30 = vpop.f32.mrb[4].mxu0 }
  0xf1   : > { %v435_v31 = vpop.f32.mrb[5].mxu0  ;;  %v657_v32 = vpack.c.bf16 %v446_v27, %v444_v26  ;;  %v434_v34 = vadd.f32 %v433_v30, %v328_v24 }
  0xf2   : > { %v655_v33 = vpack.c.bf16 %v447_v29, %v445_v28  ;;  %v436_v36 = vadd.f32 %v435_v31, %v328_v24 }
  0xf3   : > { %v448_v41 = vmax.f32 %v434_v34, 0.0 }
  0xf4   : > { %v439_v37 = vpop.f32.mrb[6].mxu0  ;;  %656 = vmatprep.subr.bf16.mxu1 %v655_v33  ;;  %v449_v43 = vmax.f32 %v436_v36, 0.0 }
  0xf5   : > { %v440_v38 = vadd.f32 %v439_v37, %v333_v35  ;;  %v441_v39 = vpop.f32.mrb[7].mxu0  ;;  %658 = vmatpush1.bf16.msra.mxu1 %v657_v32 }
  0xf6   : > { %v442_v40 = vadd.f32 %v441_v39, %v333_v35 }
  0xf7   : > { %v450_v42 = vmax.f32 %v440_v38, 0.0 }
  0xf8   : > { %v451_v44 = vmax.f32 %v442_v40, 0.0 }
  0xf9   : > { %v661_v45 = vpack.c.bf16 %v450_v42, %v448_v41 }
  0xfa   : > { %v659_v46 = vpack.c.bf16 %v451_v44, %v449_v43 }
  0xfc   : > { %660 = vmatprep.subr.bf16.mxu1 %v659_v46 }
  0xfd   : > { %662 = vmatpush1.bf16.msra.mxu1 %v661_v45 }
 0x100   : > { %650 = vmatmul.mubr.msk.f32.vlgmr.msra.gmra.mrb[0].mxu1 %vm459_vm2, %v452_v47 }
 0x1d3   : > { %v529_v49 = vpop.f32.mrb[0].mxu1 }
 0x1d4   : > { %v530_v50 = vadd.f32 %v529_v49, %v457_v48  ;;  %v531_v51 = vpop.f32.mrb[1].mxu1 }
 0x1d5   : > { %v532_v53 = vadd.f32 %v531_v51, %v457_v48 }
 0x1d6   : > { %v540_v54 = vmul.f32 %v538_v52, %v530_v50 }
 0x1d7   : > { %v541_v55 = vmul.f32 %v538_v52, %v532_v53 }
 0x1d8   : > { %676 = vtanh.f32 %v540_v54 }
 0x1d9   : > { %678 = vtanh.f32 %v541_v55 }
 0x1e2   : > { %v677_v56 = vpop.eup %676 }
 0x1e3   : > { %v679_v59 = vpop.eup %678  ;;  %v550_v60 = vmul.f32 %v677_v56, %v548_v57 }
 0x1e4   : > { %v551_v62 = vmul.f32 %v679_v59, %v548_v57 }
 0x1e5   : > { %v554_v63 = vadd.f32 %v552_v58, %v550_v60 }
 0x1e6   : > { %v555_v0 = vadd.f32 %v553_v61, %v551_v62 }
 0x1e7   : > { %v556_v1 = vmax.f32 %v554_v63, 0.0 }
 0x1e8   : > { %v557_v2 = vmax.f32 %v555_v0, 0.0 }
 0x1e9   : > { %v558_v3 = vmin.f32 %v556_v1, 1.0 }
 0x1ea   : > { %v559_v4 = vmin.f32 %v557_v2, 1.0 }
 0x1eb   : > { %560 = vst [vmem:[%s305_s22] sm:$0xff] %v558_v3  ;;  %v564_v5 = vrot.slane %v558_v3, 2 }
 0x1ec   : > { %561 = vst [vmem:[%s305_s22 + $0x8] sm:$0xff] %v559_v4  ;;  %v565_v6 = vrot.slane %v559_v4, 2 }
 0x1ed   : > { %v568_v7 = vadd.f32 %v564_v5, %v558_v3 }
 0x1ee   : > { %v569_v8 = vadd.f32 %v565_v6, %v559_v4 }
 0x1ef   : > { %v570_v9 = vmul.f32 0.5, %v568_v7 }
 0x1f0   : > { %v571_v10 = vmul.f32 0.5, %v569_v8 }
 0x1f1   : > { %v574_v11 = vrot.slane %v570_v9, 2 }
 0x1f2   : > { %v575_v12 = vrot.slane %v571_v10, 2 }
 0x1f3   : > { %578 = vst [vmem:[%s305_s22] sm:$0x6] %v574_v11 }
 0x1f4   : > { %579 = vst [vmem:[%s305_s22 + $0x8] sm:$0x6] %v575_v12 }
 0x1f5 PF: > { %s18_s27 = sadd.s32 1, %s686_s27  }
 0x1f6   : > { %p15_p4 = scmp.ge.s32.totalorder %s18_s27, 4  }
 0x1f8   :  { %17 = sbr.rel (!%p15_p4) target bundleno = 1 (0x1), region = 82 }

</bundles_post_ra>
